<compile_context>
chip_gen: v5e
topology: v5e:2x2
jax: 0.10.0
libtpu: 0.0.40
codegen_flags: <defaults>
</compile_context>

<pallas_src>
import functools

import jax
import jax.numpy as jnp
from jax.experimental import pallas as pl
from jax.experimental.pallas import tpu as pltpu


# ----------------------------- schedules (glue) ------------------------------
def make_ddpm_schedule(time_steps, linear_start=1e-4, linear_end=2e-2):
    # BETA_SCHEDULE.LINEAR
    betas = jnp.linspace(linear_start, linear_end, time_steps).astype(jnp.float32)
    alphas = 1.0 - betas
    bar_alpha = jnp.cumprod(alphas)
    sqrt_bar_alpha = jnp.sqrt(bar_alpha)
    # NOTE: reproduces the reference exactly: sqrt(1 - sqrt(bar_alpha))
    sqrt_one_minus_bar_alpha = jnp.sqrt(1.0 - sqrt_bar_alpha)
    return sqrt_bar_alpha, sqrt_one_minus_bar_alpha


# ------------------------------ block sizing ---------------------------------
def _choose_block_batch(B, H, W, vmem_budget_bytes=8 * 1024 * 1024):
    """Largest BB dividing B whose double-buffered block fits the budget.

    Multi-block tilings additionally require a 128-aligned lane width so the
    lane-axis BlockSpec stays legal. Sized against v7x's 64 MiB VMEM.
    """
    for bb in range(B, 0, -1):
        if B % bb:
            continue
        nblk = B // bb
        lanes = bb * W
        if nblk > 1 and lanes % 128:
            continue
        # 2 streamed inputs x 2 pipeline buffers x block bytes (f32)
        if 2 * 2 * H * lanes * 4 <= vmem_budget_bytes:
            return bb
    return B  # fall back: whole batch in one step


# --------------------------------- kernel ------------------------------------
def _ddpm_kernel(x_ref, n_ref, a_ref, c_ref,     # VMEM inputs
                 w_ref, b_ref,                   # SMEM inputs (flattened 1D)
                 part_ref,                       # VMEM output (per-lane partials)
                 *, W):
    # x_ref / n_ref : (H, L) slab, L = BB*W  (BB samples packed along lanes)
    # a_ref / c_ref : (1, L) per-lane q_sample coefficients
    # w_ref         : (9,)  conv weights (row-major 3x3), b_ref: (1,) bias
    x = x_ref[...]
    noise = n_ref[...]

    # ---- q_sample / normalize ----
    x_noisy = a_ref[...] * x + c_ref[...] * noise

    H, L = x.shape
    row = jax.lax.broadcasted_iota(jnp.int32, (H, L), 0)
    col = jax.lax.broadcasted_iota(jnp.int32, (H, L), 1) % W  # within-sample col

    # Hoisted boundary masks (computed once, combined with a single AND per tap).
    row_ok = {-1: row >= 1, 0: None, 1: row <= H - 2}
    col_ok = {-1: col >= 1, 0: None, 1: col <= W - 2}

    # ---- epsilon_theta stand-in: 3x3 same-padded conv (C_in = C_out = 1) ----
    # TODO(synk): epsilon_theta is an externally supplied UNet in the PyTorch
    # module; here it is a deterministic single Conv2d(1, 1, 3, padding=1).
    out = jnp.full((H, L), b_ref[0], dtype=jnp.float32)
    for dy in (-1, 0, 1):
        # one sublane roll per dy (skip the zero shift)
        s_dy = x_noisy if dy == 0 else pltpu.roll(x_noisy, shift=(-dy) % H, axis=0)
        for dx in (-1, 0, 1):
            # one lane roll per non-zero dx
            s = s_dy if dx == 0 else pltpu.roll(s_dy, shift=(-dx) % L, axis=1)
            rm, cm = row_ok[dy], col_ok[dx]
            if rm is None and cm is None:
                tap = s                                    # center tap: no select
            else:
                valid = rm if cm is None else (cm if rm is None else (rm & cm))
                tap = jnp.where(valid, s, jnp.float32(0.0))
            out = out + w_ref[(dy + 1) * 3 + (dx + 1)] * tap

    # ---- MSE partial sums: lane-wise, one sublane reduction per block ----
    diff = out - noise
    part_ref[...] = jnp.sum(diff * diff, axis=0, keepdims=True)  # (1, L)


# -------------------------------- wrapper ------------------------------------
def ddpm_p_losses(x, t, noise, conv_w, conv_b, sqrt_bar_alpha,
                  sqrt_one_minus_bar_alpha):
    B, C, H, W = x.shape
    assert C == 1, "config.in_channel == 1"

    # Gather per-sample diffusion coefficients on the host side (no dependent
    # SMEM scalar loads inside the kernel).
    a = sqrt_bar_alpha[t].astype(jnp.float32)                 # (B,)
    c = sqrt_one_minus_bar_alpha[t].astype(jnp.float32)       # (B,)

    # Lane-dense packing: packed[h, b*W + w] = x[b, 0, h, w]
    x_p = jnp.transpose(x[:, 0], (1, 0, 2)).reshape(H, B * W)
    n_p = jnp.transpose(noise[:, 0], (1, 0, 2)).reshape(H, B * W)
    a_row = jnp.repeat(a, W).reshape(1, B * W)
    c_row = jnp.repeat(c, W).reshape(1, B * W)

    BB = _choose_block_batch(B, H, W)
    nblk = B // BB
    L = BB * W

    kernel = functools.partial(_ddpm_kernel, W=W)
    smem_spec = pl.BlockSpec(memory_space=pltpu.MemorySpace.SMEM)

    partials = pl.pallas_call(
        kernel,
        out_shape=jax.ShapeDtypeStruct((nblk, L), jnp.float32),
        grid=(nblk,),
        in_specs=[
            pl.BlockSpec((H, L), lambda g: (0, g)),   # x slab
            pl.BlockSpec((H, L), lambda g: (0, g)),   # noise slab
            pl.BlockSpec((1, L), lambda g: (0, g)),   # a coefficients (per lane)
            pl.BlockSpec((1, L), lambda g: (0, g)),   # c coefficients (per lane)
            smem_spec,                                # conv weights (9,)
            smem_spec,                                # conv bias    (1,)
        ],
        out_specs=pl.BlockSpec((1, L), lambda g: (g, 0)),
        compiler_params=pltpu.CompilerParams(
            dimension_semantics=("parallel",),        # independent per-block partials
            vmem_limit_bytes=32 * 1024 * 1024),
    )(x_p, n_p, a_row, c_row, conv_w.reshape(9), conv_b.reshape(1))

    # Final mean (tiny): sum of per-lane partial sums / total element count.
    return jnp.sum(partials) / jnp.float32(B * C * H * W)


# ----------------------------- pure-JAX reference ----------------------------
def ddpm_p_losses_ref(x, t, noise, conv_w, conv_b, sba, soma):
    a = sba[t][:, None, None, None]
    c = soma[t][:, None, None, None]
    x_noisy = a * x + c * noise
    eps = jax.lax.conv_general_dilated(
        x_noisy, conv_w.reshape(1, 1, 3, 3), window_strides=(1, 1),
        padding="SAME", dimension_numbers=("NCHW", "OIHW", "NCHW"))
    eps = eps + conv_b[0, 0]
    return jnp.mean((eps - noise) ** 2)


# ---------------------------------- main --------------------------------------
if __name__ == "__main__":
    B, C, H, W = 2, 1, 16, 16
    TIME_STEPS = 100

    key = jax.random.PRNGKey(0)
    kx, kn, kt, kw, kb = jax.random.split(key, 5)

    x = jax.random.normal(kx, (B, C, H, W), dtype=jnp.float32)
    noise = jax.random.normal(kn, (B, C, H, W), dtype=jnp.float32)
    t = jax.random.randint(kt, (B,), 0, TIME_STEPS, dtype=jnp.int32)

    # Deterministic Conv2d(1, 1, 3) init (~PyTorch uniform(-1/sqrt(fan_in), ...))
    bound = 1.0 / 3.0
    conv_w = jax.random.uniform(kw, (3, 3), jnp.float32, -bound, bound)
    conv_b = jax.random.uniform(kb, (1, 1), jnp.float32, -bound, bound)

    sba, soma = make_ddpm_schedule(TIME_STEPS)

    loss = ddpm_p_losses(x, t, noise, conv_w, conv_b, sba, soma)
    loss = jax.block_until_ready(loss)

    loss_ref = ddpm_p_losses_ref(x, t, noise, conv_w, conv_b, sba, soma)
    assert jnp.allclose(loss, loss_ref, rtol=1e-4, atol=1e-5), (loss, loss_ref)

    print("KERNEL_OK")
</pallas_src>

<mosaic_0001>
module attributes {stable_mosaic.version = 11 : i64} {
  func.func @_ddpm_kernel(%arg0: i32, %arg1: memref<16x32xf32, #tpu.memory_space<vmem>>, %arg2: memref<16x32xf32, #tpu.memory_space<vmem>>, %arg3: memref<1x32xf32, #tpu.memory_space<vmem>>, %arg4: memref<1x32xf32, #tpu.memory_space<vmem>>, %arg5: memref<9xf32, #tpu.memory_space<smem>>, %arg6: memref<1xf32, #tpu.memory_space<smem>>, %arg7: memref<1x32xf32, #tpu.memory_space<vmem>>) attributes {dimension_semantics = [#tpu.dimension_semantics<parallel>], iteration_bounds = array<i64: 1>, scalar_prefetch = 0 : i64, scratch_operands = 0 : i64, tpu.core_type = #tpu.core_type<tc>, window_params = [{transform_indices = @transform_0, window_bounds = array<i64: 16, 32>}, {transform_indices = @transform_1, window_bounds = array<i64: 16, 32>}, {transform_indices = @transform_2, window_bounds = array<i64: 1, 32>}, {transform_indices = @transform_3, window_bounds = array<i64: 1, 32>}, {transform_indices = @transform_4, window_bounds = array<i64: 9>}, {transform_indices = @transform_5, window_bounds = array<i64: 1>}, {transform_indices = @transform_6, window_bounds = array<i64: 1, 32>}]} {
    %c0 = arith.constant 0 : index
    %c0_0 = arith.constant 0 : index
    %0 = vector.load %arg1[%c0, %c0_0] : memref<16x32xf32, #tpu.memory_space<vmem>>, vector<16x32xf32>
    %c0_1 = arith.constant 0 : index
    %c0_2 = arith.constant 0 : index
    %1 = vector.load %arg2[%c0_1, %c0_2] : memref<16x32xf32, #tpu.memory_space<vmem>>, vector<16x32xf32>
    %c0_3 = arith.constant 0 : index
    %c0_4 = arith.constant 0 : index
    %2 = vector.load %arg3[%c0_3, %c0_4] : memref<1x32xf32, #tpu.memory_space<vmem>>, vector<1x32xf32>
    %3 = vector.broadcast %2 : vector<1x32xf32> to vector<16x32xf32>
    %4 = arith.mulf %3, %0 : vector<16x32xf32>
    %c0_5 = arith.constant 0 : index
    %c0_6 = arith.constant 0 : index
    %5 = vector.load %arg4[%c0_5, %c0_6] : memref<1x32xf32, #tpu.memory_space<vmem>>, vector<1x32xf32>
    %6 = vector.broadcast %5 : vector<1x32xf32> to vector<16x32xf32>
    %7 = arith.mulf %6, %1 : vector<16x32xf32>
    %8 = arith.addf %4, %7 : vector<16x32xf32>
    %9 = tpu.iota {dimensions = array<i32: 0>} : vector<16x32xi32>
    %10 = tpu.iota {dimensions = array<i32: 1>} : vector<16x32xi32>
    %c16_i32 = arith.constant 16 : i32
    %c0_i32 = arith.constant 0 : i32
    %11 = arith.cmpi eq, %c16_i32, %c0_i32 : i32
    %c1_i32 = arith.constant 1 : i32
    %12 = arith.select %11, %c1_i32, %c16_i32 : i32
    %13 = vector.broadcast %12 : i32 to vector<16x32xi32>
    %14 = arith.remsi %10, %13 : vector<16x32xi32>
    %c0_i32_7 = arith.constant 0 : i32
    %15 = vector.broadcast %c0_i32_7 : i32 to vector<16x32xi32>
    %16 = arith.cmpi ne, %14, %15 : vector<16x32xi32>
    %c0_i32_8 = arith.constant 0 : i32
    %17 = vector.broadcast %c0_i32_8 : i32 to vector<16x32xi32>
    %18 = arith.cmpi slt, %14, %17 : vector<16x32xi32>
    %c0_i32_9 = arith.constant 0 : i32
    %19 = arith.cmpi slt, %12, %c0_i32_9 : i32
    %20 = vector.broadcast %19 : i1 to vector<16x32xi1>
    %21 = vector.broadcast %20 : vector<16x32xi1> to vector<16x32xi1>
    %22 = arith.xori %18, %21 : vector<16x32xi1>
    %23 = arith.andi %22, %16 : vector<16x32xi1>
    %24 = vector.broadcast %12 : i32 to vector<16x32xi32>
    %25 = arith.addi %14, %24 : vector<16x32xi32>
    %26 = arith.select %23, %25, %14 : vector<16x32xi1>, vector<16x32xi32>
    %c1_i32_10 = arith.constant 1 : i32
    %27 = vector.broadcast %c1_i32_10 : i32 to vector<16x32xi32>
    %28 = arith.cmpi sge, %9, %27 : vector<16x32xi32>
    %c14_i32 = arith.constant 14 : i32
    %29 = vector.broadcast %c14_i32 : i32 to vector<16x32xi32>
    %30 = arith.cmpi sle, %9, %29 : vector<16x32xi32>
    %c1_i32_11 = arith.constant 1 : i32
    %31 = vector.broadcast %c1_i32_11 : i32 to vector<16x32xi32>
    %32 = arith.cmpi sge, %26, %31 : vector<16x32xi32>
    %c14_i32_12 = arith.constant 14 : i32
    %33 = vector.broadcast %c14_i32_12 : i32 to vector<16x32xi32>
    %34 = arith.cmpi sle, %26, %33 : vector<16x32xi32>
    %c0_13 = arith.constant 0 : index
    %35 = memref.load %arg6[%c0_13] : memref<1xf32, #tpu.memory_space<smem>>
    %36 = vector.broadcast %35 : f32 to vector<16x32xf32>
    %c1_i32_14 = arith.constant 1 : i32
    %37 = tpu.dynamic_rotate %8 by %c1_i32_14 dim 0 : vector<16x32xf32>, i32 -> vector<16x32xf32>
    %c1_i32_15 = arith.constant 1 : i32
    %38 = tpu.dynamic_rotate %37 by %c1_i32_15 dim 1 : vector<16x32xf32>, i32 -> vector<16x32xf32>
    %39 = arith.andi %28, %32 : vector<16x32xi1>
    %cst = arith.constant 0.000000e+00 : f32
    %40 = vector.broadcast %cst : f32 to vector<16x32xf32>
    %41 = arith.select %39, %38, %40 : vector<16x32xi1>, vector<16x32xf32>
    %c0_16 = arith.constant 0 : index
    %42 = memref.load %arg5[%c0_16] : memref<9xf32, #tpu.memory_space<smem>>
    %43 = vector.broadcast %42 : f32 to vector<16x32xf32>
    %44 = arith.mulf %43, %41 : vector<16x32xf32>
    %45 = arith.addf %36, %44 : vector<16x32xf32>
    %cst_17 = arith.constant 0.000000e+00 : f32
    %46 = vector.broadcast %cst_17 : f32 to vector<16x32xf32>
    %47 = arith.select %28, %37, %46 : vector<16x32xi1>, vector<16x32xf32>
    %c1 = arith.constant 1 : index
    %48 = memref.load %arg5[%c1] : memref<9xf32, #tpu.memory_space<smem>>
    %49 = vector.broadcast %48 : f32 to vector<16x32xf32>
    %50 = arith.mulf %49, %47 : vector<16x32xf32>
    %51 = arith.addf %45, %50 : vector<16x32xf32>
    %c31_i32 = arith.constant 31 : i32
    %52 = tpu.dynamic_rotate %37 by %c31_i32 dim 1 : vector<16x32xf32>, i32 -> vector<16x32xf32>
    %53 = arith.andi %28, %34 : vector<16x32xi1>
    %cst_18 = arith.constant 0.000000e+00 : f32
    %54 = vector.broadcast %cst_18 : f32 to vector<16x32xf32>
    %55 = arith.select %53, %52, %54 : vector<16x32xi1>, vector<16x32xf32>
    %c2 = arith.constant 2 : index
    %56 = memref.load %arg5[%c2] : memref<9xf32, #tpu.memory_space<smem>>
    %57 = vector.broadcast %56 : f32 to vector<16x32xf32>
    %58 = arith.mulf %57, %55 : vector<16x32xf32>
    %59 = arith.addf %51, %58 : vector<16x32xf32>
    %c1_i32_19 = arith.constant 1 : i32
    %60 = tpu.dynamic_rotate %8 by %c1_i32_19 dim 1 : vector<16x32xf32>, i32 -> vector<16x32xf32>
    %cst_20 = arith.constant 0.000000e+00 : f32
    %61 = vector.broadcast %cst_20 : f32 to vector<16x32xf32>
    %62 = arith.select %32, %60, %61 : vector<16x32xi1>, vector<16x32xf32>
    %c3 = arith.constant 3 : index
    %63 = memref.load %arg5[%c3] : memref<9xf32, #tpu.memory_space<smem>>
    %64 = vector.broadcast %63 : f32 to vector<16x32xf32>
    %65 = arith.mulf %64, %62 : vector<16x32xf32>
    %66 = arith.addf %59, %65 : vector<16x32xf32>
    %c4 = arith.constant 4 : index
    %67 = memref.load %arg5[%c4] : memref<9xf32, #tpu.memory_space<smem>>
    %68 = vector.broadcast %67 : f32 to vector<16x32xf32>
    %69 = arith.mulf %68, %8 : vector<16x32xf32>
    %70 = arith.addf %66, %69 : vector<16x32xf32>
    %c31_i32_21 = arith.constant 31 : i32
    %71 = tpu.dynamic_rotate %8 by %c31_i32_21 dim 1 : vector<16x32xf32>, i32 -> vector<16x32xf32>
    %cst_22 = arith.constant 0.000000e+00 : f32
    %72 = vector.broadcast %cst_22 : f32 to vector<16x32xf32>
    %73 = arith.select %34, %71, %72 : vector<16x32xi1>, vector<16x32xf32>
    %c5 = arith.constant 5 : index
    %74 = memref.load %arg5[%c5] : memref<9xf32, #tpu.memory_space<smem>>
    %75 = vector.broadcast %74 : f32 to vector<16x32xf32>
    %76 = arith.mulf %75, %73 : vector<16x32xf32>
    %77 = arith.addf %70, %76 : vector<16x32xf32>
    %c15_i32 = arith.constant 15 : i32
    %78 = tpu.dynamic_rotate %8 by %c15_i32 dim 0 : vector<16x32xf32>, i32 -> vector<16x32xf32>
    %c1_i32_23 = arith.constant 1 : i32
    %79 = tpu.dynamic_rotate %78 by %c1_i32_23 dim 1 : vector<16x32xf32>, i32 -> vector<16x32xf32>
    %80 = arith.andi %30, %32 : vector<16x32xi1>
    %cst_24 = arith.constant 0.000000e+00 : f32
    %81 = vector.broadcast %cst_24 : f32 to vector<16x32xf32>
    %82 = arith.select %80, %79, %81 : vector<16x32xi1>, vector<16x32xf32>
    %c6 = arith.constant 6 : index
    %83 = memref.load %arg5[%c6] : memref<9xf32, #tpu.memory_space<smem>>
    %84 = vector.broadcast %83 : f32 to vector<16x32xf32>
    %85 = arith.mulf %84, %82 : vector<16x32xf32>
    %86 = arith.addf %77, %85 : vector<16x32xf32>
    %cst_25 = arith.constant 0.000000e+00 : f32
    %87 = vector.broadcast %cst_25 : f32 to vector<16x32xf32>
    %88 = arith.select %30, %78, %87 : vector<16x32xi1>, vector<16x32xf32>
    %c7 = arith.constant 7 : index
    %89 = memref.load %arg5[%c7] : memref<9xf32, #tpu.memory_space<smem>>
    %90 = vector.broadcast %89 : f32 to vector<16x32xf32>
    %91 = arith.mulf %90, %88 : vector<16x32xf32>
    %92 = arith.addf %86, %91 : vector<16x32xf32>
    %c31_i32_26 = arith.constant 31 : i32
    %93 = tpu.dynamic_rotate %78 by %c31_i32_26 dim 1 : vector<16x32xf32>, i32 -> vector<16x32xf32>
    %94 = arith.andi %30, %34 : vector<16x32xi1>
    %cst_27 = arith.constant 0.000000e+00 : f32
    %95 = vector.broadcast %cst_27 : f32 to vector<16x32xf32>
    %96 = arith.select %94, %93, %95 : vector<16x32xi1>, vector<16x32xf32>
    %c8 = arith.constant 8 : index
    %97 = memref.load %arg5[%c8] : memref<9xf32, #tpu.memory_space<smem>>
    %98 = vector.broadcast %97 : f32 to vector<16x32xf32>
    %99 = arith.mulf %98, %96 : vector<16x32xf32>
    %100 = arith.addf %92, %99 : vector<16x32xf32>
    %101 = arith.subf %100, %1 : vector<16x32xf32>
    %102 = arith.mulf %101, %101 : vector<16x32xf32>
    %cst_28 = arith.constant dense<0.000000e+00> : vector<32xf32>
    %103 = vector.multi_reduction <add>, %102, %cst_28 [0] : vector<16x32xf32> to vector<32xf32>
    %104 = vector.shape_cast %103 : vector<32xf32> to vector<1x32xf32>
    %c0_29 = arith.constant 0 : index
    %c0_30 = arith.constant 0 : index
    %105 = vector.load %arg7[%c0_29, %c0_30] : memref<1x32xf32, #tpu.memory_space<vmem>>, vector<1x32xf32>
    tpu.vector_store %arg7[%c0_29, %c0_30], %104 {strides = array<i32>} : memref<1x32xf32, #tpu.memory_space<vmem>>, vector<1x32xf32>,
    return
  }
  func.func @transform_0(%arg0: i32) -> (i32, i32) {
    %c0_i32 = arith.constant 0 : i32
    %c0_i32_0 = arith.constant 0 : i32
    return %c0_i32, %arg0 : i32, i32
  }
  func.func @transform_1(%arg0: i32) -> (i32, i32) {
    %c0_i32 = arith.constant 0 : i32
    %c0_i32_0 = arith.constant 0 : i32
    return %c0_i32, %arg0 : i32, i32
  }
  func.func @transform_2(%arg0: i32) -> (i32, i32) {
    %c0_i32 = arith.constant 0 : i32
    %c0_i32_0 = arith.constant 0 : i32
    return %c0_i32, %arg0 : i32, i32
  }
  func.func @transform_3(%arg0: i32) -> (i32, i32) {
    %c0_i32 = arith.constant 0 : i32
    %c0_i32_0 = arith.constant 0 : i32
    return %c0_i32, %arg0 : i32, i32
  }
  func.func @transform_4(%arg0: i32) -> i32 {
    %c0_i32 = arith.constant 0 : i32
    %c0_i32_0 = arith.constant 0 : i32
    return %c0_i32 : i32
  }
  func.func @transform_5(%arg0: i32) -> i32 {
    %c0_i32 = arith.constant 0 : i32
    %c0_i32_0 = arith.constant 0 : i32
    return %c0_i32 : i32
  }
  func.func @transform_6(%arg0: i32) -> (i32, i32) {
    %c0_i32 = arith.constant 0 : i32
    %c0_i32_0 = arith.constant 0 : i32
    return %arg0, %c0_i32 : i32, i32
  }
}

</mosaic_0001>

<bundles_post_ra>
// kernel: tpu_custom_call.1
= control target key start
LH: loop header
LB: loop body
LE: loop exit
PB: predicated region body
PF: predicated region fallthrough
CT: control target
= control target key end

     0   :  { %12 = vsyncpa [#allocation4], 0  ;;  %s639_s0 = inlined_call_operand.hbm [shape: f32[16,32], index: 0, kind: input, shape index: {}]   ;;  %s640_s1 = inlined_call_operand.hbm [shape: f32[16,32], index: 1, kind: input, shape index: {}]   ;;  %s641_s2 = inlined_call_operand.vmem [shape: f32[1,32], index: 2, kind: input, shape index: {}]   ;;  %s642_s3 = inlined_call_operand.vmem [shape: f32[1,32], index: 3, kind: input, shape index: {}]   ;;  %s643_s4 = inlined_call_operand.vmem [shape: f32[9], index: 4, kind: input, shape index: {}]   ;;  %s644_s5 = inlined_call_operand.<no memory space> [shape: f32[1], index: 5, kind: input, shape index: {}]   ;;  %s645_s6 = inlined_call_operand.hbm [shape: f32[1,32], index: 6, kind: output, shape index: {}]  }
   0x1   :  { %13 = vsyncpa [#allocation8], 0 }
   0x2   :  { %14 = vsyncpa [#allocation6], 0 }
   0x3   :  { %15 = vsyncpa [#allocation5], 0  ;;  %s20_s23 = sshll.u32 %s639_s0, 4  ;;  %s426_s24 = smov [#allocation3]   ;;  %s21_s23 = int_to_ptr.hbm [resolvable:$true] %s20_s23 }
   0x4   :  { %s22_s25 = sshll.u32 %s426_s24, 4  ;;  %s33_s28 = sshll.u32 %s640_s1, 4  ;;  %s23_s25 = int_to_ptr.vmem [resolvable:$true] %s22_s25  ;;  %s34_s28 = int_to_ptr.hbm [resolvable:$true] %s33_s28 }
   0x5   :  { %s427_s29 = smov 128   ;;  %s428_s30 = smov 8  }
   0x6   :  { %28 = dma.hbm_to_vmem [thread:$0]  %s21_s23, 256, %s23_s25, [#allocation4], %s427_s29, %s427_s29, %s428_s30  }
   0x7   :  { %s429_s7 = smov [#allocation7]   ;;  %s51_s11 = sshll.u32 %s643_s4, 4  ;;  %s52_s11 = int_to_ptr.vmem [resolvable:$true] %s51_s11 }
   0x8   :  { %s35_s8 = sshll.u32 %s429_s7, 4  ;;  %s430_s0 = smov [#allocation9]   ;;  %s36_s8 = int_to_ptr.vmem [resolvable:$true] %s35_s8 }
   0x9   :  { %41 = dma.hbm_to_vmem [thread:$0]  %s34_s28, 256, %s36_s8, [#allocation8], %s427_s29, %s427_s29, %s428_s30  }
   0xa   :  { %54 = dma.vmem_to_smem %s52_s11, 16, %s430_s0, [#allocation6]  }
   0xb   :  { %418 = dma.done.wait [#allocation4], 256  }
   0xc   :  { %419 = vsyncadd [#allocation4], 4294967040 }
   0xd   :  { %420 = dma.done.wait [#allocation8], 256  }
   0xe   :  { %421 = vsyncadd [#allocation8], 4294967040 }
   0xf   :  { %422 = dma.done.wait [#allocation6], 16  }
  0x10   :  { %423 = vsyncadd [#allocation6], 4294967280 }
  0x11   :  { %69 = sfence }
  0x12   :  { %v70_v0 = vld [vmem:[#allocation3] sm:$0xff]  ;;  %v71_v1 = vld [vmem:[#allocation3 + $0x8] sm:$0xff]  ;;  %v479_v2 = vld [vmem:[#allocation7] sm:$0xff]  ;;  %v88_v3 = vlaneseq  ;;  %vm118_vm2 = vcmask 1047808   ;;  %s433_s14 = smov 97   ;;  %s555_s15 = sld [smem:[#allocation9 + $0x1]]  ;;  %v112_v58 = vstv %s644_s5 }
  0x13   :  { %v481_v4 = vld [vmem:[#allocation7 + $0x8] sm:$0xff]  ;;  %v332_v5 = vld [vmem:[%s641_s2] ss:$0 sm:$0xff]  ;;  %s431_s2 = smov 32   ;;  %s557_s16 = sld [smem:[#allocation9]]  ;;  %vm284_vm11 = vcmask 261120  }
  0x14   :  { %v333_v6 = vld [vmem:[%s642_s3] ss:$0 sm:$0xff]  ;;  %v78_v7 = vmul.f32 %v332_v5, %v70_v0  ;;  %v79_v8 = vmul.f32 %v332_v5, %v71_v1  ;;  %v490_v9 = vshrl.u32 %v88_v3, 7  ;;  %s432_s3 = smov 127   ;;  %v92_v46 = vand.u32 127, %v88_v3  ;;  %s559_s17 = sld [smem:[#allocation9 + $0x2]] }
  0x15   :  { %v84_v10 = vmul.f32 %v333_v6, %v479_v2  ;;  %v85_v11 = vmul.f32 %v333_v6, %v481_v4  ;;  %s565_s18 = sld [smem:[#allocation9 + $0x3]]  ;;  %s434_s25 = smov [#allocation10]   ;;  %vm294_vm12 = vcmask 253952  }
  0x16   :  { %vm115_vm0 = vcmp.lt.s32.totalorder %v490_v9, 1  ;;  %vm223_vm1 = vcmp.lt.s32.totalorder %v490_v9, 7  ;;  %v97_v49 = vand.u32 15, %v92_v46  ;;  %vm105_vm4 = vcmp.ge.s32.totalorder %v490_v9, 1  ;;  %s577_s19 = sld [smem:[#allocation9 + $0x4]]  ;;  %s301_s26 = sshll.u32 %s434_s25, 4  ;;  %s302_s26 = int_to_ptr.vmem [resolvable:$true] %s301_s26 }
  0x17   :  { %v494_v12 = vadd.f32 %v84_v10, %v78_v7  ;;  %v496_v13 = vadd.f32 %v85_v11, %v79_v8  ;;  %s588_s22 = sld [smem:[#allocation9 + $0x5]]  ;;  %s303_s29 = sshll.u32 %s645_s6, 4  ;;  %s304_s29 = int_to_ptr.hbm [resolvable:$true] %s303_s29 }
  0x18   :  { %vm561_vm3 = vcmp.ge.s32.totalorder %v97_v49, 1  ;;  %vm570_vm6 = vcmp.le.s32.totalorder %v97_v49, 14  ;;  %v152_v54 = vstv %s555_s15  ;;  %s591_s5 = sld [smem:[#allocation9 + $0x6]] }
  0x19   :  { %173 = vrot.lane.b32.xlu1 %v494_v12, %s431_s2  ;;  %v113_v14 = vrot.slane %v494_v12, 7  ;;  %v114_v15 = vrot.slane %v496_v13, 7  ;;  %v221_v16 = vrot.slane %v494_v12, 1  ;;  %v222_v17 = vrot.slane %v496_v13, 1  ;;  %vm131_vm5 = vmand %vm105_vm4, %vm561_vm3  ;;  %s598_s23 = sld [smem:[#allocation9 + $0x7]] }
  0x1a   :  { %v144_v55 = vstv %s557_s16  ;;  %vm157_vm7 = vmand %vm105_vm4, %vm570_vm6  ;;  %v168_v62 = vstv %s559_s17  ;;  %s614_s24 = sld [smem:[#allocation9 + $0x8]] }
  0x1b   :  { %v506_v18 = vsel %vm115_vm0, %v114_v15, %v113_v14  ;;  %v508_v19 = vsel %vm223_vm1, %v221_v16, %v222_v17  ;;  %v516_v20 = vsel %vm115_vm0, %v113_v14, %v114_v15  ;;  %v518_v21 = vsel %vm223_vm1, %v222_v17, %v221_v16 }
  0x1c   :  { %119 = vrot.lane.b32.xlu0 %v506_v18, %s431_s2  ;;  %226 = vrot.lane.b32.xlu2 %v508_v19, %s431_s2  ;;  %v149_v53 = vsel %vm105_vm4, %v506_v18, 0.0  ;;  %v196_v1 = vstv %s565_s18  ;;  %v202_v7 = vstv %s577_s19  ;;  %v90_v16 = vadd.s32 8, %v490_v9 }
  0x1d   :  { %v153_v60 = vmul.f32 %v152_v54, %v149_v53 }
  0x1e   :  { %vm108_vm8 = vcmp.le.s32.totalorder %v90_v16, 14 }
  0x1f   :  { %vm610_vm9 = vmand %vm108_vm8, %vm561_vm3 }
  0x20   :  { %vm265_vm10 = vmand %vm108_vm8, %vm570_vm6 }
  0x21   :  { %176 = vrot.lane.b32.xlu1 %v496_v13, %s431_s2 }
  0x24   :  { %122 = vrot.lane.b32.xlu0 %v516_v20, %s431_s2  ;;  %229 = vrot.lane.b32.xlu2 %v518_v21, %s431_s2 }
  0x76   :  { %v227_v22 = vpop.permute.xlu2 %226 }
  0x77   :  { %v228_v33 = vsel %vm118_vm2, %v227_v22, %v508_v19 }
  0x7e   :  { %v230_v27 = vpop.permute.xlu2 %229 }
  0x7f   :  { %v231_v28 = vsel %vm118_vm2, %v230_v27, %v518_v21 }
  0x8b   :  { %v174_v23 = vpop.permute.xlu1 %173 }
  0x8c   :  { %v175_v24 = vsel %vm118_vm2, %v174_v23, %v494_v12  ;;  %v154_v23 = vmul.f32 %v152_v54, %v516_v20  ;;  %v275_v54 = vstv %s614_s24 }
  0x8d   :  { %179 = vrot.lane.b32.xlu2 %v175_v24, %s431_s2  ;;  %v203_v24 = vmul.f32 %v202_v7, %v494_v12 }
  0x8e   :  { %v120_v25 = vpop.permute.xlu0 %119 }
  0x8f   :  { %v121_v26 = vsel %vm118_vm2, %v120_v25, %v506_v18 }
  0x90   :  { %125 = vrot.lane.b32.xlu0 %v121_v26, %s431_s2 }
  0x93   :  { %v177_v29 = vpop.permute.xlu1 %176 }
  0x94   :  { %v178_v30 = vsel %vm118_vm2, %v177_v29, %v496_v13 }
  0x95   :  { %234 = vrot.lane.b32.xlu2 %v231_v28, %s431_s2  ;;  %v216_v28 = vstv %s588_s22 }
  0x96   :  { %v123_v31 = vpop.permute.xlu0 %122 }
  0x97   :  { %v124_v32 = vsel %vm118_vm2, %v123_v31, %v516_v20 }
  0x98   :  { %181 = vrot.lane.b32.xlu0 %v178_v30, %s431_s2  ;;  %127 = vrot.lane.b32.xlu1 %v124_v32, %s431_s2 }
  0xa0   :  { %232 = vrot.lane.b32.xlu1 %v228_v33, %s431_s2 }
  0xe7   :  { %v180_v34 = vpop.permute.xlu2 %179 }
  0xe8   :  { %v183_v35 = vsel %vm118_vm2, %v180_v34, %v494_v12  ;;  %v204_v34 = vmul.f32 %v202_v7, %v496_v13 }
  0xe9   :  { %207 = vrot.lane.b32.xlu0 %v183_v35, %s432_s3  ;;  %187 = vrot.lane.b32.xlu1 %v183_v35, %s433_s14 }
  0xef   :  { %v235_v42 = vpop.permute.xlu2 %234 }
  0xf0   :  { %v237_v43 = vsel %vm118_vm2, %v235_v42, %v518_v21 }
 0x102   :  { %v126_v36 = vpop.permute.xlu0 %125 }
 0x103   :  { %v129_v37 = vsel %vm118_vm2, %v126_v36, %v506_v18 }
 0x104   :  { %135 = vrot.lane.b32.xlu0 %v129_v37, %s433_s14 }
 0x10a   :  { %v128_v38 = vpop.permute.xlu1 %127  ;;  %v182_v39 = vpop.permute.xlu0 %181 }
 0x10b   :  { %v130_v40 = vsel %vm118_vm2, %v128_v38, %v516_v20  ;;  %v184_v41 = vsel %vm118_vm2, %v182_v39, %v496_v13 }
 0x10c   :  { %137 = vrot.lane.b32.xlu1 %v130_v40, %s433_s14  ;;  %161 = vrot.lane.b32.xlu0 %v130_v40, %s432_s3 }
 0x10d   :  { %189 = vrot.lane.b32.xlu2 %v184_v41, %s433_s14 }
 0x112   :  { %v233_v44 = vpop.permute.xlu1 %232 }
 0x113   :  { %v236_v45 = vsel %vm118_vm2, %v233_v44, %v508_v19  ;;  %v259_v44 = vstv %s598_s23 }
 0x114   :  { %209 = vrot.lane.b32.xlu1 %v184_v41, %s432_s3  ;;  %244 = vrot.lane.b32.xlu0 %v237_v43, %s433_s14 }
 0x115   :  { %159 = vrot.lane.b32.xlu2 %v129_v37, %s432_s3  ;;  %v251_v37 = vstv %s591_s5 }
 0x11c   :  { %266 = vrot.lane.b32.xlu1 %v236_v45, %s432_s3 }
 0x11d   :  { %242 = vrot.lane.b32.xlu2 %v236_v45, %s433_s14 }
 0x125   :  { %268 = vrot.lane.b32.xlu2 %v237_v43, %s432_s3  ;;  %v257_v43 = vsel %vm108_vm8, %v518_v21, 0.0 }
 0x126   :  { %v261_v49 = vmul.f32 %v259_v44, %v257_v43 }
 0x15b   :  { %v208_v48 = vpop.permute.xlu0 %207  ;;  %v188_v51 = vpop.permute.xlu1 %187 }
 0x15c   :  { %v193_v3 = vsel %vm561_vm3, %v188_v51, 0.0  ;;  %v213_v9 = vsel %vm570_vm6, %v208_v48, 0.0  ;;  %v260_v51 = vmul.f32 %v259_v44, %v508_v19 }
 0x15d   :  { %v197_v8 = vmul.f32 %v196_v1, %v193_v3  ;;  %v217_v32 = vmul.f32 %v216_v28, %v213_v9 }
 0x167   :  { %v190_v47 = vpop.permute.xlu2 %189 }
 0x168   :  { %v194_v27 = vsel %vm561_vm3, %v190_v47, 0.0 }
 0x169   :  { %v198_v31 = vmul.f32 %v196_v1, %v194_v27 }
 0x16f   :  { %v160_v56 = vpop.permute.xlu2 %159 }
 0x170   :  { %v165_v63 = vsel %vm157_vm7, %v160_v56, 0.0 }
 0x171   :  { %v169_v5 = vmul.f32 %v168_v62, %v165_v63 }
 0x176   :  { %v136_v57 = vpop.permute.xlu0 %135 }
 0x177   :  { %v141_v59 = vsel %vm131_vm5, %v136_v57, 0.0  ;;  %v243_v17 = vpop.permute.xlu2 %242 }
 0x178   :  { %v145_v61 = vmul.f32 %v144_v55, %v141_v59  ;;  %v248_v38 = vsel %vm561_vm3, %v243_v17, 0.0 }
 0x179   :  { %v252_v13 = vmul.f32 %v251_v37, %v248_v38 }
 0x17a   :  { %v147_v0 = vadd.f32 %v145_v61, %v112_v58 }
 0x17c   :  { %v155_v6 = vadd.f32 %v153_v60, %v147_v0 }
 0x17e   :  { %v171_v10 = vadd.f32 %v169_v5, %v155_v6  ;;  %v138_v11 = vpop.permute.xlu1 %137  ;;  %v162_v14 = vpop.permute.xlu0 %161 }
 0x17f   :  { %v142_v15 = vsel %vm561_vm3, %v138_v11, 0.0  ;;  %v166_v25 = vsel %vm570_vm6, %v162_v14, 0.0  ;;  %v269_v45 = vpop.permute.xlu2 %268 }
 0x180   :  { %v199_v18 = vadd.f32 %v197_v8, %v171_v10  ;;  %v146_v22 = vmul.f32 %v144_v55, %v142_v15  ;;  %v170_v30 = vmul.f32 %v168_v62, %v166_v25  ;;  %v273_v55 = vsel %vm265_vm10, %v269_v45, 0.0 }
 0x182   :  { %v148_v26 = vadd.f32 %v146_v22, %v112_v58  ;;  %v205_v20 = vadd.f32 %v203_v24, %v199_v18  ;;  %v277_v58 = vmul.f32 %v275_v54, %v273_v55 }
 0x184   :  { %v156_v29 = vadd.f32 %v154_v23, %v148_v26  ;;  %v219_v42 = vadd.f32 %v217_v32, %v205_v20 }
 0x186   :  { %v172_v33 = vadd.f32 %v170_v30, %v156_v29  ;;  %v210_v35 = vpop.permute.xlu1 %209  ;;  %v245_v36 = vpop.permute.xlu0 %244  ;;  %v254_v53 = vadd.f32 %v252_v13, %v219_v42 }
 0x187   :  { %v214_v39 = vsel %vm570_vm6, %v210_v35, 0.0  ;;  %v249_v40 = vsel %vm610_vm9, %v245_v36, 0.0 }
 0x188   :  { %v200_v41 = vadd.f32 %v198_v31, %v172_v33  ;;  %v218_v47 = vmul.f32 %v216_v28, %v214_v39  ;;  %v253_v48 = vmul.f32 %v251_v37, %v249_v40  ;;  %v262_v60 = vadd.f32 %v260_v51, %v254_v53 }
 0x18a   :  { %v206_v46 = vadd.f32 %v204_v34, %v200_v41 }
 0x18c   :  { %v220_v50 = vadd.f32 %v218_v47, %v206_v46 }
 0x18e   :  { %v255_v56 = vadd.f32 %v253_v48, %v220_v50  ;;  %v267_v57 = vpop.permute.xlu1 %266 }
 0x18f   :  { %v272_v21 = vsel %vm570_vm6, %v267_v57, 0.0 }
 0x190   :  { %v263_v59 = vadd.f32 %v261_v49, %v255_v56  ;;  %v276_v61 = vmul.f32 %v275_v54, %v272_v21 }
 0x192   :  { %v279_v62 = vadd.f32 %v277_v58, %v263_v59  ;;  %v278_v63 = vadd.f32 %v276_v61, %v262_v60 }
 0x194   :  { %v281_v0 = vsub.f32 %v279_v62, %v481_v4  ;;  %v280_v1 = vsub.f32 %v278_v63, %v479_v2 }
 0x196   :  { %v283_v19 = vmul.f32 %v281_v0, %v281_v0  ;;  %v282_v3 = vmul.f32 %v280_v1, %v280_v1 }
 0x198   :  { %v285_v5 = vsel %vm284_vm11, %v282_v3, 0.0  ;;  %v286_v6 = vsel %vm284_vm11, %v283_v19, 0.0 }
 0x199   :  { %v287_v7 = vadd.f32 %v286_v6, %v285_v5 }
 0x19b   :  { %v288_v8 = vrot.slane %v287_v7, 4 }
 0x19d   :  { %v289_v10 = vadd.f32 %v288_v8, %v287_v7 }
 0x19f   :  { %v290_v52 = vrot.slane %v289_v10, 2 }
 0x1a1   :  { %v291_v11 = vadd.f32 %v290_v52, %v289_v10 }
 0x1a3   :  { %v292_v14 = vrot.slane %v291_v11, 1 }
 0x1a5   :  { %v293_v4 = vadd.f32 %v292_v14, %v291_v11 }
 0x1a7   :  { %295 = vst.msk [vmem:[#allocation10] sm:$0x1] %vm294_vm12, %v293_v4 }
 0x1a8   :  { %306 = dma.vmem_to_hbm [thread:$0]  %s302_s26, 16, %s304_s29, [#allocation5]  }
 0x1a9   :  { %424 = dma.done.wait [#allocation5], 16  }
 0x1aa   :  { %425 = vsyncadd [#allocation5], 4294967280 }
 0x1ab   :  { %311 = vsyncpa [#allocation4], 1 }
 0x1ac   :  { %312 = vsyncpa [#allocation8], 1 }
 0x1ad   :  { %313 = vsyncpa [#allocation5], 1 }
 0x1ae   :  { %314 = vsyncpa [#allocation6], 1 }

</bundles_post_ra>
